<compile_context>
chip_gen: v6e
topology: v6e:2x2x1
jax: 0.10.0
libtpu: 0.0.40
codegen_flags: <defaults>
</compile_context>

<pallas_src>
import functools

import jax
import jax.numpy as jnp
from jax.experimental import pallas as pl
from jax.experimental.pallas import tpu as pltpu

# ----------------------------- model config ---------------------------------
INPUT_SIZE = 24
CONV_SIZE = 16
CHAR_SIZE = INPUT_SIZE - CONV_SIZE          # 8
N_KERNELS = 8
HIDDEN_SIZES = [32, 32]
OUTPUT_SIZE = 16
N_QUANTILES = 5                             # len([0.01, 0.25, 0.5, 0.75, 0.99])
TRANSF_IN = CHAR_SIZE + N_KERNELS           # 16
OUT_FEATS = N_QUANTILES * OUTPUT_SIZE       # 80
LN_EPS = 1e-5

_SELU_ALPHA = 1.6732632423543772848170429916717
_SELU_SCALE = 1.0507009873554804934193349852946


def _round_up(x, m):
    return ((x + m - 1) // m) * m


def _selu(x):
    return _SELU_SCALE * jnp.where(x > 0, x, _SELU_ALPHA * (jnp.exp(x) - 1.0))


def _layernorm(x, gamma, beta):
    mean = jnp.mean(x, axis=-1, keepdims=True)
    var = jnp.mean(jnp.square(x - mean), axis=-1, keepdims=True)
    xhat = (x - mean) * jax.lax.rsqrt(var + LN_EPS)
    return xhat * gamma + beta


# ------------------------------- kernel --------------------------------------
def _erdqn_kernel(num_hidden, o_ref, cw_ref, cb_ref,
                  w0s_ref, w0c_ref, b0_ref, g0_ref, be0_ref, *rest):
    # rest = [w_i, b_i, g_i, be_i] for i in 1..num_hidden-1, then w_out, b_out, out_ref
    out_ref = rest[-1]
    wo_ref, bo_ref = rest[-3], rest[-2]
    layer_refs = rest[:-3]

    o = o_ref[...]                                   # (TB, INPUT_SIZE)
    stock = o[:, :CONV_SIZE]                         # (TB, CONV_SIZE)
    chars = o[:, CONV_SIZE:]                         # (TB, CHAR_SIZE)

    # Conv1d(1, n_kernels, k=1) followed by mean over the length axis.
    stock_mean = jnp.mean(stock, axis=-1, keepdims=True)        # (TB, 1)
    stock_summary = stock_mean * cw_ref[...] + cb_ref[...]      # (TB, N_KERNELS)
    ss_act = _selu(stock_summary)

    # First hidden layer with the concat([selu(ss), chars]) folded into two
    # matmuls (avoids a lane-axis concatenate / relayout every grid step).
    h = (jnp.dot(ss_act, w0s_ref[...], preferred_element_type=jnp.float32)
         + jnp.dot(chars, w0c_ref[...], preferred_element_type=jnp.float32)
         + b0_ref[...])
    h = _layernorm(_selu(h), g0_ref[...], be0_ref[...])

    # Remaining hidden layers.
    for i in range(num_hidden - 1):
        w = layer_refs[4 * i][...]        # (in, out)
        b = layer_refs[4 * i + 1][...]    # (1, out)
        g = layer_refs[4 * i + 2][...]    # (1, out)
        be = layer_refs[4 * i + 3][...]   # (1, out)
        h = jnp.dot(h, w, preferred_element_type=jnp.float32) + b
        h = _layernorm(_selu(h), g, be)

    out_ref[...] = (jnp.dot(h, wo_ref[...], preferred_element_type=jnp.float32)
                    + bo_ref[...])                    # (TB, OUT_FEATS)


# ------------------------------- wrapper --------------------------------------
def erdqn_forward(o, params, *, max_tile=2048):
    """o: (B, INPUT_SIZE) f32 -> (B, OUTPUT_SIZE, N_QUANTILES) f32."""
    B = o.shape[0]

    # Batch tile: large enough to amortize per-grid-step overhead, small enough
    # to stay well inside the scoped VMEM limit with double buffering.
    TB = min(max_tile, _round_up(max(B, 1), 8))
    B_pad = _round_up(B, TB)
    o_p = jnp.pad(o, ((0, B_pad - B), (0, 0))) if B_pad != B else o

    # Split the first-layer weight along its input dim (host-side, once).
    w0 = params["w0"]
    w0_stock = w0[:N_KERNELS, :]          # (N_KERNELS, H0)
    w0_chars = w0[N_KERNELS:, :]          # (CHAR_SIZE, H0)

    flat_inputs = [o_p, params["conv_w"], params["conv_b"],
                   w0_stock, w0_chars,
                   params["b0"], params["g0"], params["be0"]]
    for i in range(1, len(HIDDEN_SIZES)):
        flat_inputs += [params[f"w{i}"], params[f"b{i}"],
                        params[f"g{i}"], params[f"be{i}"]]
    flat_inputs += [params["w_out"], params["b_out"]]

    # Constant-index full-array blocks: DMA'd once, stay VMEM-resident.
    def const_spec(arr):
        nd = arr.ndim
        return pl.BlockSpec(arr.shape, lambda i, _nd=nd: (0,) * _nd)

    in_specs = [pl.BlockSpec((TB, INPUT_SIZE), lambda i: (i, 0))]
    in_specs += [const_spec(a) for a in flat_inputs[1:]]
    out_spec = pl.BlockSpec((TB, OUT_FEATS), lambda i: (i, 0))

    # Advisory cost estimate for XLA scheduling around the custom call.
    mm_flops = (TRANSF_IN * HIDDEN_SIZES[0]
                + sum(a * b for a, b in zip(HIDDEN_SIZES[:-1], HIDDEN_SIZES[1:]))
                + HIDDEN_SIZES[-1] * OUT_FEATS)
    cost = pl.CostEstimate(
        flops=2 * B_pad * mm_flops,
        transcendentals=B_pad * (N_KERNELS + sum(HIDDEN_SIZES)),
        bytes_accessed=4 * B_pad * (INPUT_SIZE + OUT_FEATS),
    )

    res = pl.pallas_call(
        functools.partial(_erdqn_kernel, len(HIDDEN_SIZES)),
        out_shape=jax.ShapeDtypeStruct((B_pad, OUT_FEATS), jnp.float32),
        grid=(B_pad // TB,),
        in_specs=in_specs,
        out_specs=out_spec,
        compiler_params=pltpu.CompilerParams(
            dimension_semantics=("parallel",)),   # megacore sharding on v7x
        cost_estimate=cost,
    )(*flat_inputs)

    return res[:B].reshape(B, OUTPUT_SIZE, N_QUANTILES)


# ------------------------- deterministic parameters ---------------------------
def init_params(key):
    params = {}
    keys = jax.random.split(key, 32)
    ki = iter(range(32))

    def nrm(k, shape, scale):
        return (scale * jax.random.normal(keys[k], shape)).astype(jnp.float32)

    # Conv1d(1, N_KERNELS, kernel_size=1): weight (K,1,1), bias (K,) -> stored (1,K)
    params["conv_w"] = nrm(next(ki), (1, N_KERNELS), 0.5)
    params["conv_b"] = nrm(next(ki), (1, N_KERNELS), 0.1)

    in_sizes = [TRANSF_IN] + HIDDEN_SIZES[:-1]
    for i, (n_in, n_out) in enumerate(zip(in_sizes, HIDDEN_SIZES)):
        params[f"w{i}"] = nrm(next(ki), (n_in, n_out), 1.0 / jnp.sqrt(n_in))
        params[f"b{i}"] = nrm(next(ki), (1, n_out), 0.05)
        params[f"g{i}"] = jnp.ones((1, n_out), jnp.float32)
        params[f"be{i}"] = jnp.zeros((1, n_out), jnp.float32)

    last = HIDDEN_SIZES[-1]
    params["w_out"] = nrm(next(ki), (last, OUT_FEATS), 1.0 / jnp.sqrt(last))
    params["b_out"] = nrm(next(ki), (1, OUT_FEATS), 0.05)
    return params


# ---------------------------- pure-JAX reference -------------------------------
def erdqn_reference(o, params):
    stock, chars = o[:, :CONV_SIZE], o[:, CONV_SIZE:]
    ss = jnp.mean(stock, axis=-1, keepdims=True) * params["conv_w"] + params["conv_b"]
    h = jnp.concatenate([_selu(ss), chars], axis=-1)
    for i in range(len(HIDDEN_SIZES)):
        h = h @ params[f"w{i}"] + params[f"b{i}"]
        h = _selu(h)
        h = _layernorm(h, params[f"g{i}"], params[f"be{i}"])
    res = h @ params["w_out"] + params["b_out"]
    return res.reshape(-1, OUTPUT_SIZE, N_QUANTILES)


# ----------------------------------- main --------------------------------------
if __name__ == "__main__":
    key = jax.random.PRNGKey(0)
    k_x, k_x2, k_p = jax.random.split(key, 3)
    params = init_params(k_p)

    # Small case (B=2): exercises batch padding up to one 8-row tile.
    B = 2
    o = jax.random.normal(k_x, (B, INPUT_SIZE), dtype=jnp.float32)
    out = jax.block_until_ready(erdqn_forward(o, params))
    ref = erdqn_reference(o, params)
    assert out.shape == (B, OUTPUT_SIZE, N_QUANTILES)
    assert jnp.allclose(out, ref, rtol=1e-5, atol=1e-4), "mismatch vs reference (B=2)"

    # Larger case: exercises the multi-step batch grid (grid > 1) + padding.
    B2 = 4100
    o2 = jax.random.normal(k_x2, (B2, INPUT_SIZE), dtype=jnp.float32)
    out2 = jax.block_until_ready(erdqn_forward(o2, params))
    ref2 = erdqn_reference(o2, params)
    assert out2.shape == (B2, OUTPUT_SIZE, N_QUANTILES)
    assert jnp.allclose(out2, ref2, rtol=1e-5, atol=1e-4), "mismatch vs reference (B=4100)"

    print("KERNEL_OK")
</pallas_src>

<mosaic_0001>
module attributes {stable_mosaic.version = 11 : i64} {
  func.func @_erdqn_kernel(%arg0: i32, %arg1: memref<8x24xf32, #tpu.memory_space<vmem>>, %arg2: memref<1x8xf32, #tpu.memory_space<vmem>>, %arg3: memref<1x8xf32, #tpu.memory_space<vmem>>, %arg4: memref<8x32xf32, #tpu.memory_space<vmem>>, %arg5: memref<8x32xf32, #tpu.memory_space<vmem>>, %arg6: memref<1x32xf32, #tpu.memory_space<vmem>>, %arg7: memref<1x32xf32, #tpu.memory_space<vmem>>, %arg8: memref<1x32xf32, #tpu.memory_space<vmem>>, %arg9: memref<32x32xf32, #tpu.memory_space<vmem>>, %arg10: memref<1x32xf32, #tpu.memory_space<vmem>>, %arg11: memref<1x32xf32, #tpu.memory_space<vmem>>, %arg12: memref<1x32xf32, #tpu.memory_space<vmem>>, %arg13: memref<32x80xf32, #tpu.memory_space<vmem>>, %arg14: memref<1x80xf32, #tpu.memory_space<vmem>>, %arg15: memref<8x80xf32, #tpu.memory_space<vmem>>) attributes {dimension_semantics = [#tpu.dimension_semantics<parallel>], iteration_bounds = array<i64: 1>, scalar_prefetch = 0 : i64, scratch_operands = 0 : i64, tpu.core_type = #tpu.core_type<tc>, window_params = [{transform_indices = @transform_0, window_bounds = array<i64: 8, 24>}, {pipeline_mode = #tpu.pipeline_mode<synchronous>, transform_indices = @transform_1, window_bounds = array<i64: 1, 8>}, {pipeline_mode = #tpu.pipeline_mode<synchronous>, transform_indices = @transform_2, window_bounds = array<i64: 1, 8>}, {pipeline_mode = #tpu.pipeline_mode<synchronous>, transform_indices = @transform_3, window_bounds = array<i64: 8, 32>}, {pipeline_mode = #tpu.pipeline_mode<synchronous>, transform_indices = @transform_4, window_bounds = array<i64: 8, 32>}, {pipeline_mode = #tpu.pipeline_mode<synchronous>, transform_indices = @transform_5, window_bounds = array<i64: 1, 32>}, {pipeline_mode = #tpu.pipeline_mode<synchronous>, transform_indices = @transform_6, window_bounds = array<i64: 1, 32>}, {pipeline_mode = #tpu.pipeline_mode<synchronous>, transform_indices = @transform_7, window_bounds = array<i64: 1, 32>}, {pipeline_mode = #tpu.pipeline_mode<synchronous>, transform_indices = @transform_8, window_bounds = array<i64: 32, 32>}, {pipeline_mode = #tpu.pipeline_mode<synchronous>, transform_indices = @transform_9, window_bounds = array<i64: 1, 32>}, {pipeline_mode = #tpu.pipeline_mode<synchronous>, transform_indices = @transform_10, window_bounds = array<i64: 1, 32>}, {pipeline_mode = #tpu.pipeline_mode<synchronous>, transform_indices = @transform_11, window_bounds = array<i64: 1, 32>}, {pipeline_mode = #tpu.pipeline_mode<synchronous>, transform_indices = @transform_12, window_bounds = array<i64: 32, 80>}, {pipeline_mode = #tpu.pipeline_mode<synchronous>, transform_indices = @transform_13, window_bounds = array<i64: 1, 80>}, {transform_indices = @transform_14, window_bounds = array<i64: 8, 80>}]} {
    %c0 = arith.constant 0 : index
    %c0_0 = arith.constant 0 : index
    %0 = vector.load %arg1[%c0, %c0_0] : memref<8x24xf32, #tpu.memory_space<vmem>>, vector<8x24xf32>
    %1 = vector.extract_strided_slice %0 {offsets = [0, 0], sizes = [8, 16], strides = [1, 1]} : vector<8x24xf32> to vector<8x16xf32>
    %2 = vector.extract_strided_slice %0 {offsets = [0, 16], sizes = [8, 8], strides = [1, 1]} : vector<8x24xf32> to vector<8x8xf32>
    %cst = arith.constant dense<0.000000e+00> : vector<8xf32>
    %3 = vector.multi_reduction <add>, %1, %cst [1] : vector<8x16xf32> to vector<8xf32>
    %4 = vector.shape_cast %3 : vector<8xf32> to vector<8x1xf32>
    %cst_1 = arith.constant 1.600000e+01 : f32
    %5 = vector.broadcast %cst_1 : f32 to vector<8x1xf32>
    %6 = arith.divf %4, %5 : vector<8x1xf32>
    %c0_2 = arith.constant 0 : index
    %c0_3 = arith.constant 0 : index
    %7 = vector.load %arg2[%c0_2, %c0_3] : memref<1x8xf32, #tpu.memory_space<vmem>>, vector<1x8xf32>
    %8 = vector.broadcast %6 : vector<8x1xf32> to vector<8x8xf32>
    %9 = vector.broadcast %7 : vector<1x8xf32> to vector<8x8xf32>
    %10 = arith.mulf %8, %9 : vector<8x8xf32>
    %c0_4 = arith.constant 0 : index
    %c0_5 = arith.constant 0 : index
    %11 = vector.load %arg3[%c0_4, %c0_5] : memref<1x8xf32, #tpu.memory_space<vmem>>, vector<1x8xf32>
    %12 = vector.broadcast %11 : vector<1x8xf32> to vector<8x8xf32>
    %13 = arith.addf %10, %12 : vector<8x8xf32>
    %cst_6 = arith.constant 0.000000e+00 : f32
    %14 = vector.broadcast %cst_6 : f32 to vector<8x8xf32>
    %15 = arith.cmpf ogt, %13, %14 : vector<8x8xf32>
    %16 = math.exp %13 : vector<8x8xf32>
    %cst_7 = arith.constant 1.000000e+00 : f32
    %17 = vector.broadcast %cst_7 : f32 to vector<8x8xf32>
    %18 = arith.subf %16, %17 : vector<8x8xf32>
    %cst_8 = arith.constant 1.67326319 : f32
    %19 = vector.broadcast %cst_8 : f32 to vector<8x8xf32>
    %20 = arith.mulf %19, %18 : vector<8x8xf32>
    %21 = arith.select %15, %13, %20 : vector<8x8xi1>, vector<8x8xf32>
    %cst_9 = arith.constant 1.05070102 : f32
    %22 = vector.broadcast %cst_9 : f32 to vector<8x8xf32>
    %23 = arith.mulf %22, %21 : vector<8x8xf32>
    %c0_10 = arith.constant 0 : index
    %c0_11 = arith.constant 0 : index
    %24 = vector.load %arg4[%c0_10, %c0_11] : memref<8x32xf32, #tpu.memory_space<vmem>>, vector<8x32xf32>
    %cst_12 = arith.constant dense<0.000000e+00> : vector<8x32xf32>
    %25 = tpu.matmul %23, %24, %cst_12 {dimension_numbers = #tpu.dot_dimension_numbers<[1], [0], [0], [1], [0, 0, 1, 1], [], []>} : vector<8x8xf32>, vector<8x32xf32>, vector<8x32xf32> -> vector<8x32xf32>
    %c0_13 = arith.constant 0 : index
    %c0_14 = arith.constant 0 : index
    %26 = vector.load %arg5[%c0_13, %c0_14] : memref<8x32xf32, #tpu.memory_space<vmem>>, vector<8x32xf32>
    %cst_15 = arith.constant dense<0.000000e+00> : vector<8x32xf32>
    %27 = tpu.matmul %2, %26, %cst_15 {dimension_numbers = #tpu.dot_dimension_numbers<[1], [0], [0], [1], [0, 0, 1, 1], [], []>} : vector<8x8xf32>, vector<8x32xf32>, vector<8x32xf32> -> vector<8x32xf32>
    %28 = arith.addf %25, %27 : vector<8x32xf32>
    %c0_16 = arith.constant 0 : index
    %c0_17 = arith.constant 0 : index
    %29 = vector.load %arg6[%c0_16, %c0_17] : memref<1x32xf32, #tpu.memory_space<vmem>>, vector<1x32xf32>
    %30 = vector.broadcast %29 : vector<1x32xf32> to vector<8x32xf32>
    %31 = arith.addf %28, %30 : vector<8x32xf32>
    %cst_18 = arith.constant 0.000000e+00 : f32
    %32 = vector.broadcast %cst_18 : f32 to vector<8x32xf32>
    %33 = arith.cmpf ogt, %31, %32 : vector<8x32xf32>
    %34 = math.exp %31 : vector<8x32xf32>
    %cst_19 = arith.constant 1.000000e+00 : f32
    %35 = vector.broadcast %cst_19 : f32 to vector<8x32xf32>
    %36 = arith.subf %34, %35 : vector<8x32xf32>
    %cst_20 = arith.constant 1.67326319 : f32
    %37 = vector.broadcast %cst_20 : f32 to vector<8x32xf32>
    %38 = arith.mulf %37, %36 : vector<8x32xf32>
    %39 = arith.select %33, %31, %38 : vector<8x32xi1>, vector<8x32xf32>
    %cst_21 = arith.constant 1.05070102 : f32
    %40 = vector.broadcast %cst_21 : f32 to vector<8x32xf32>
    %41 = arith.mulf %40, %39 : vector<8x32xf32>
    %c0_22 = arith.constant 0 : index
    %c0_23 = arith.constant 0 : index
    %42 = vector.load %arg7[%c0_22, %c0_23] : memref<1x32xf32, #tpu.memory_space<vmem>>, vector<1x32xf32>
    %c0_24 = arith.constant 0 : index
    %c0_25 = arith.constant 0 : index
    %43 = vector.load %arg8[%c0_24, %c0_25] : memref<1x32xf32, #tpu.memory_space<vmem>>, vector<1x32xf32>
    %cst_26 = arith.constant dense<0.000000e+00> : vector<8xf32>
    %44 = vector.multi_reduction <add>, %41, %cst_26 [1] : vector<8x32xf32> to vector<8xf32>
    %45 = vector.shape_cast %44 : vector<8xf32> to vector<8x1xf32>
    %cst_27 = arith.constant 3.200000e+01 : f32
    %46 = vector.broadcast %cst_27 : f32 to vector<8x1xf32>
    %47 = arith.divf %45, %46 : vector<8x1xf32>
    %48 = vector.broadcast %47 : vector<8x1xf32> to vector<8x32xf32>
    %49 = arith.subf %41, %48 : vector<8x32xf32>
    %50 = arith.mulf %49, %49 : vector<8x32xf32>
    %cst_28 = arith.constant dense<0.000000e+00> : vector<8xf32>
    %51 = vector.multi_reduction <add>, %50, %cst_28 [1] : vector<8x32xf32> to vector<8xf32>
    %52 = vector.shape_cast %51 : vector<8xf32> to vector<8x1xf32>
    %cst_29 = arith.constant 3.200000e+01 : f32
    %53 = vector.broadcast %cst_29 : f32 to vector<8x1xf32>
    %54 = arith.divf %52, %53 : vector<8x1xf32>
    %55 = vector.broadcast %47 : vector<8x1xf32> to vector<8x32xf32>
    %56 = arith.subf %41, %55 : vector<8x32xf32>
    %cst_30 = arith.constant 9.99999974E-6 : f32
    %57 = vector.broadcast %cst_30 : f32 to vector<8x1xf32>
    %58 = arith.addf %54, %57 : vector<8x1xf32>
    %59 = math.rsqrt %58 : vector<8x1xf32>
    %60 = vector.broadcast %59 : vector<8x1xf32> to vector<8x32xf32>
    %61 = arith.mulf %56, %60 : vector<8x32xf32>
    %62 = vector.broadcast %42 : vector<1x32xf32> to vector<8x32xf32>
    %63 = arith.mulf %61, %62 : vector<8x32xf32>
    %64 = vector.broadcast %43 : vector<1x32xf32> to vector<8x32xf32>
    %65 = arith.addf %63, %64 : vector<8x32xf32>
    %c0_31 = arith.constant 0 : index
    %c0_32 = arith.constant 0 : index
    %66 = vector.load %arg9[%c0_31, %c0_32] : memref<32x32xf32, #tpu.memory_space<vmem>>, vector<32x32xf32>
    %c0_33 = arith.constant 0 : index
    %c0_34 = arith.constant 0 : index
    %67 = vector.load %arg10[%c0_33, %c0_34] : memref<1x32xf32, #tpu.memory_space<vmem>>, vector<1x32xf32>
    %c0_35 = arith.constant 0 : index
    %c0_36 = arith.constant 0 : index
    %68 = vector.load %arg11[%c0_35, %c0_36] : memref<1x32xf32, #tpu.memory_space<vmem>>, vector<1x32xf32>
    %c0_37 = arith.constant 0 : index
    %c0_38 = arith.constant 0 : index
    %69 = vector.load %arg12[%c0_37, %c0_38] : memref<1x32xf32, #tpu.memory_space<vmem>>, vector<1x32xf32>
    %cst_39 = arith.constant dense<0.000000e+00> : vector<8x32xf32>
    %70 = tpu.matmul %65, %66, %cst_39 {dimension_numbers = #tpu.dot_dimension_numbers<[1], [0], [0], [1], [0, 0, 1, 1], [], []>} : vector<8x32xf32>, vector<32x32xf32>, vector<8x32xf32> -> vector<8x32xf32>
    %71 = vector.broadcast %67 : vector<1x32xf32> to vector<8x32xf32>
    %72 = arith.addf %70, %71 : vector<8x32xf32>
    %cst_40 = arith.constant 0.000000e+00 : f32
    %73 = vector.broadcast %cst_40 : f32 to vector<8x32xf32>
    %74 = arith.cmpf ogt, %72, %73 : vector<8x32xf32>
    %75 = math.exp %72 : vector<8x32xf32>
    %cst_41 = arith.constant 1.000000e+00 : f32
    %76 = vector.broadcast %cst_41 : f32 to vector<8x32xf32>
    %77 = arith.subf %75, %76 : vector<8x32xf32>
    %cst_42 = arith.constant 1.67326319 : f32
    %78 = vector.broadcast %cst_42 : f32 to vector<8x32xf32>
    %79 = arith.mulf %78, %77 : vector<8x32xf32>
    %80 = arith.select %74, %72, %79 : vector<8x32xi1>, vector<8x32xf32>
    %cst_43 = arith.constant 1.05070102 : f32
    %81 = vector.broadcast %cst_43 : f32 to vector<8x32xf32>
    %82 = arith.mulf %81, %80 : vector<8x32xf32>
    %cst_44 = arith.constant dense<0.000000e+00> : vector<8xf32>
    %83 = vector.multi_reduction <add>, %82, %cst_44 [1] : vector<8x32xf32> to vector<8xf32>
    %84 = vector.shape_cast %83 : vector<8xf32> to vector<8x1xf32>
    %cst_45 = arith.constant 3.200000e+01 : f32
    %85 = vector.broadcast %cst_45 : f32 to vector<8x1xf32>
    %86 = arith.divf %84, %85 : vector<8x1xf32>
    %87 = vector.broadcast %86 : vector<8x1xf32> to vector<8x32xf32>
    %88 = arith.subf %82, %87 : vector<8x32xf32>
    %89 = arith.mulf %88, %88 : vector<8x32xf32>
    %cst_46 = arith.constant dense<0.000000e+00> : vector<8xf32>
    %90 = vector.multi_reduction <add>, %89, %cst_46 [1] : vector<8x32xf32> to vector<8xf32>
    %91 = vector.shape_cast %90 : vector<8xf32> to vector<8x1xf32>
    %cst_47 = arith.constant 3.200000e+01 : f32
    %92 = vector.broadcast %cst_47 : f32 to vector<8x1xf32>
    %93 = arith.divf %91, %92 : vector<8x1xf32>
    %94 = vector.broadcast %86 : vector<8x1xf32> to vector<8x32xf32>
    %95 = arith.subf %82, %94 : vector<8x32xf32>
    %cst_48 = arith.constant 9.99999974E-6 : f32
    %96 = vector.broadcast %cst_48 : f32 to vector<8x1xf32>
    %97 = arith.addf %93, %96 : vector<8x1xf32>
    %98 = math.rsqrt %97 : vector<8x1xf32>
    %99 = vector.broadcast %98 : vector<8x1xf32> to vector<8x32xf32>
    %100 = arith.mulf %95, %99 : vector<8x32xf32>
    %101 = vector.broadcast %68 : vector<1x32xf32> to vector<8x32xf32>
    %102 = arith.mulf %100, %101 : vector<8x32xf32>
    %103 = vector.broadcast %69 : vector<1x32xf32> to vector<8x32xf32>
    %104 = arith.addf %102, %103 : vector<8x32xf32>
    %c0_49 = arith.constant 0 : index
    %c0_50 = arith.constant 0 : index
    %105 = vector.load %arg13[%c0_49, %c0_50] : memref<32x80xf32, #tpu.memory_space<vmem>>, vector<32x80xf32>
    %cst_51 = arith.constant dense<0.000000e+00> : vector<8x80xf32>
    %106 = tpu.matmul %104, %105, %cst_51 {dimension_numbers = #tpu.dot_dimension_numbers<[1], [0], [0], [1], [0, 0, 1, 1], [], []>} : vector<8x32xf32>, vector<32x80xf32>, vector<8x80xf32> -> vector<8x80xf32>
    %c0_52 = arith.constant 0 : index
    %c0_53 = arith.constant 0 : index
    %107 = vector.load %arg14[%c0_52, %c0_53] : memref<1x80xf32, #tpu.memory_space<vmem>>, vector<1x80xf32>
    %108 = vector.broadcast %107 : vector<1x80xf32> to vector<8x80xf32>
    %109 = arith.addf %106, %108 : vector<8x80xf32>
    %c0_54 = arith.constant 0 : index
    %c0_55 = arith.constant 0 : index
    %110 = vector.load %arg15[%c0_54, %c0_55] : memref<8x80xf32, #tpu.memory_space<vmem>>, vector<8x80xf32>
    tpu.vector_store %arg15[%c0_54, %c0_55], %109 {strides = array<i32>} : memref<8x80xf32, #tpu.memory_space<vmem>>, vector<8x80xf32>,
    return
  }
  func.func @transform_0(%arg0: i32) -> (i32, i32) {
    %c0_i32 = arith.constant 0 : i32
    %c0_i32_0 = arith.constant 0 : i32
    return %arg0, %c0_i32 : i32, i32
  }
  func.func @transform_1(%arg0: i32) -> (i32, i32) {
    %c0_i32 = arith.constant 0 : i32
    %c0_i32_0 = arith.constant 0 : i32
    %c0_i32_1 = arith.constant 0 : i32
    return %c0_i32, %c0_i32_0 : i32, i32
  }
  func.func @transform_2(%arg0: i32) -> (i32, i32) {
    %c0_i32 = arith.constant 0 : i32
    %c0_i32_0 = arith.constant 0 : i32
    %c0_i32_1 = arith.constant 0 : i32
    return %c0_i32, %c0_i32_0 : i32, i32
  }
  func.func @transform_3(%arg0: i32) -> (i32, i32) {
    %c0_i32 = arith.constant 0 : i32
    %c0_i32_0 = arith.constant 0 : i32
    %c0_i32_1 = arith.constant 0 : i32
    return %c0_i32, %c0_i32_0 : i32, i32
  }
  func.func @transform_4(%arg0: i32) -> (i32, i32) {
    %c0_i32 = arith.constant 0 : i32
    %c0_i32_0 = arith.constant 0 : i32
    %c0_i32_1 = arith.constant 0 : i32
    return %c0_i32, %c0_i32_0 : i32, i32
  }
  func.func @transform_5(%arg0: i32) -> (i32, i32) {
    %c0_i32 = arith.constant 0 : i32
    %c0_i32_0 = arith.constant 0 : i32
    %c0_i32_1 = arith.constant 0 : i32
    return %c0_i32, %c0_i32_0 : i32, i32
  }
  func.func @transform_6(%arg0: i32) -> (i32, i32) {
    %c0_i32 = arith.constant 0 : i32
    %c0_i32_0 = arith.constant 0 : i32
    %c0_i32_1 = arith.constant 0 : i32
    return %c0_i32, %c0_i32_0 : i32, i32
  }
  func.func @transform_7(%arg0: i32) -> (i32, i32) {
    %c0_i32 = arith.constant 0 : i32
    %c0_i32_0 = arith.constant 0 : i32
    %c0_i32_1 = arith.constant 0 : i32
    return %c0_i32, %c0_i32_0 : i32, i32
  }
  func.func @transform_8(%arg0: i32) -> (i32, i32) {
    %c0_i32 = arith.constant 0 : i32
    %c0_i32_0 = arith.constant 0 : i32
    %c0_i32_1 = arith.constant 0 : i32
    return %c0_i32, %c0_i32_0 : i32, i32
  }
  func.func @transform_9(%arg0: i32) -> (i32, i32) {
    %c0_i32 = arith.constant 0 : i32
    %c0_i32_0 = arith.constant 0 : i32
    %c0_i32_1 = arith.constant 0 : i32
    return %c0_i32, %c0_i32_0 : i32, i32
  }
  func.func @transform_10(%arg0: i32) -> (i32, i32) {
    %c0_i32 = arith.constant 0 : i32
    %c0_i32_0 = arith.constant 0 : i32
    %c0_i32_1 = arith.constant 0 : i32
    return %c0_i32, %c0_i32_0 : i32, i32
  }
  func.func @transform_11(%arg0: i32) -> (i32, i32) {
    %c0_i32 = arith.constant 0 : i32
    %c0_i32_0 = arith.constant 0 : i32
    %c0_i32_1 = arith.constant 0 : i32
    return %c0_i32, %c0_i32_0 : i32, i32
  }
  func.func @transform_12(%arg0: i32) -> (i32, i32) {
    %c0_i32 = arith.constant 0 : i32
    %c0_i32_0 = arith.constant 0 : i32
    %c0_i32_1 = arith.constant 0 : i32
    return %c0_i32, %c0_i32_0 : i32, i32
  }
  func.func @transform_13(%arg0: i32) -> (i32, i32) {
    %c0_i32 = arith.constant 0 : i32
    %c0_i32_0 = arith.constant 0 : i32
    %c0_i32_1 = arith.constant 0 : i32
    return %c0_i32, %c0_i32_0 : i32, i32
  }
  func.func @transform_14(%arg0: i32) -> (i32, i32) {
    %c0_i32 = arith.constant 0 : i32
    %c0_i32_0 = arith.constant 0 : i32
    return %arg0, %c0_i32 : i32, i32
  }
}

</mosaic_0001>

<bundles_post_ra>
// kernel: tpu_custom_call.1
= control target key start
LH: loop header
LB: loop body
LE: loop exit
PB: predicated region body
PF: predicated region fallthrough
CT: control target
= control target key end

     0   :  { %19 = vsyncpa [#allocation3], 0  ;;  %s932_s0 = inlined_call_operand.hbm [shape: f32[8,24], index: 0, kind: input, shape index: {}]   ;;  %s933_s1 = inlined_call_operand.vmem [shape: f32[1,8], index: 1, kind: input, shape index: {}]   ;;  %s934_s2 = inlined_call_operand.vmem [shape: f32[1,8], index: 2, kind: input, shape index: {}]   ;;  %s935_s3 = inlined_call_operand.hbm [shape: f32[8,32], index: 3, kind: input, shape index: {}]   ;;  %s936_s4 = inlined_call_operand.hbm [shape: f32[8,32], index: 4, kind: input, shape index: {}]   ;;  %s937_s5 = inlined_call_operand.vmem [shape: f32[1,32], index: 5, kind: input, shape index: {}]   ;;  %s938_s6 = inlined_call_operand.vmem [shape: f32[1,32], index: 6, kind: input, shape index: {}]   ;;  %s939_s7 = inlined_call_operand.vmem [shape: f32[1,32], index: 7, kind: input, shape index: {}]   ;;  %s940_s8 = inlined_call_operand.hbm [shape: f32[32,32], index: 8, kind: input, shape index: {}]   ;;  %s941_s9 = inlined_call_operand.vmem [shape: f32[1,32], index: 9, kind: input, shape index: {}]   ;;  %s942_s10 = inlined_call_operand.vmem [shape: f32[1,32], index: 10, kind: input, shape index: {}]   ;;  %s943_s11 = inlined_call_operand.vmem [shape: f32[1,32], index: 11, kind: input, shape index: {}]   ;;  %s944_s12 = inlined_call_operand.hbm [shape: f32[32,80], index: 12, kind: input, shape index: {}]   ;;  %s945_s13 = inlined_call_operand.vmem [shape: f32[1,80], index: 13, kind: input, shape index: {}]   ;;  %s946_s14 = inlined_call_operand.hbm [shape: f32[8,80], index: 14, kind: output, shape index: {}]  }
   0x1   :  { %20 = vsyncpa [#allocation6], 0 }
   0x2   :  { %21 = vsyncpa [#allocation9], 0 }
   0x3   :  { %22 = vsyncpa [#allocation4], 0  ;;  %s771_s29 = smov [#allocation5]   ;;  %s772_s15 = smov [#allocation8]  }
   0x4   :  { %s43_s30 = sshll.u32 %s771_s29, 4  ;;  %s68_s16 = sshll.u32 %s772_s15, 4  ;;  %s44_s30 = int_to_ptr.vmem [resolvable:$true] %s43_s30  ;;  %s69_s16 = int_to_ptr.vmem [resolvable:$true] %s68_s16 }
   0x5   :  { %s651_s17 = scalar_lea.vmem %s44_s30, 128  ;;  %p656_p1 = scmp.lt.s32.totalorder %s44_s30, %s44_s30 }
   0x6   :  { %p652_p0 = scmp.ne.s32.totalorder %s44_s30, %s651_s17  ;;  %p657_p2 = scmp.lt.s32.totalorder %s651_s17, %s651_s17 }
   0x8   :  { %p658_p3 = por %p657_p2, %p656_p1 }
   0xa   :  { %p659_p4 = pnand %p658_p3, %p652_p0 }
   0xc   :  { %662 = shalt.err (!%p659_p4)
}
   0xd   :  { %46 = dma.hbm_to_vmem [thread:$0]  %s935_s3, 128, %s44_s30, [#allocation6]  }
   0xe   :  { %s671_s20 = scalar_lea.vmem %s69_s16, 512  ;;  %p676_p6 = scmp.lt.s32.totalorder %s69_s16, %s69_s16 }
   0xf   :  { %p672_p5 = scmp.ne.s32.totalorder %s69_s16, %s671_s20  ;;  %p677_p7 = scmp.lt.s32.totalorder %s671_s20, %s671_s20 }
  0x11   :  { %p678_p8 = por %p677_p7, %p676_p6 }
  0x13   :  { %p679_p9 = pnand %p678_p8, %p672_p5 }
  0x15   :  { %682 = shalt.err (!%p679_p9)
}
  0x16   :  { %s773_s21 = smov 128   ;;  %s774_s22 = smov 8  }
  0x17   :  { %74 = dma.hbm_to_vmem [thread:$0]  %s940_s8, 512, %s69_s16, [#allocation9], %s773_s21, %s773_s21, %s774_s22  }
  0x18   :  { %s775_s25 = smov [#allocation2]   ;;  %s776_s27 = smov [#allocation7]  }
  0x19   :  { %s29_s26 = sshll.u32 %s775_s25, 4  ;;  %s53_s3 = sshll.u32 %s776_s27, 4  ;;  %s30_s26 = int_to_ptr.vmem [resolvable:$true] %s29_s26  ;;  %s54_s3 = int_to_ptr.vmem [resolvable:$true] %s53_s3 }
  0x1a   :  { %s691_s28 = scalar_lea.vmem %s30_s26, 128  ;;  %p696_p11 = scmp.lt.s32.totalorder %s30_s26, %s30_s26 }
  0x1b   :  { %p692_p10 = scmp.ne.s32.totalorder %s30_s26, %s691_s28  ;;  %p697_p12 = scmp.lt.s32.totalorder %s691_s28, %s691_s28 }
  0x1d   :  { %p698_p13 = por %p697_p12, %p696_p11 }
  0x1f   :  { %p699_p0 = pnand %p698_p13, %p692_p10 }
  0x21   :  { %702 = shalt.err (!%p699_p0)
}
  0x22   :  { %32 = dma.hbm_to_vmem [thread:$0]  %s932_s0, 128, %s30_s26, [#allocation3]  }
  0x23   :  { %s711_s15 = scalar_lea.vmem %s54_s3, 128  ;;  %p716_p2 = scmp.lt.s32.totalorder %s54_s3, %s54_s3 }
  0x24   :  { %p712_p1 = scmp.ne.s32.totalorder %s54_s3, %s711_s15  ;;  %p717_p3 = scmp.lt.s32.totalorder %s711_s15, %s711_s15 }
  0x26   :  { %p718_p4 = por %p717_p3, %p716_p2 }
  0x28   :  { %p719_p5 = pnand %p718_p4, %p712_p1 }
  0x2a   :  { %722 = shalt.err (!%p719_p5)
}
  0x2b   :  { %56 = dma.hbm_to_vmem [thread:$0]  %s936_s4, 128, %s54_s3, [#allocation6]  }
  0x2c   :  { %s777_s17 = smov [#allocation10]  }
  0x2d   :  { %s86_s18 = sshll.u32 %s777_s17, 4  ;;  %s87_s18 = int_to_ptr.vmem [resolvable:$true] %s86_s18 }
  0x2e   :  { %s731_s19 = scalar_lea.vmem %s87_s18, 512  ;;  %p736_p7 = scmp.lt.s32.totalorder %s87_s18, %s87_s18 }
  0x2f   :  { %p732_p6 = scmp.ne.s32.totalorder %s87_s18, %s731_s19  ;;  %p737_p8 = scmp.lt.s32.totalorder %s731_s19, %s731_s19 }
  0x31   :  { %p738_p9 = por %p737_p8, %p736_p7 }
  0x33   :  { %p739_p10 = pnand %p738_p9, %p732_p6 }
  0x35   :  { %742 = shalt.err (!%p739_p10)
}
  0x36   :  { %92 = dma.hbm_to_vmem [thread:$0]  %s944_s12, 512, %s87_s18, [#allocation9], %s773_s21, %s773_s21, %s774_s22  }
  0x37   :  { %763 = dma.done.wait [#allocation3], 128  }
  0x38   :  { %764 = vsyncadd [#allocation3], 4294967168 }
  0x39   :  { %765 = dma.done.wait [#allocation6], 256  }
  0x3a   :  { %766 = vsyncadd [#allocation6], 4294967040 }
  0x3b   :  { %767 = dma.done.wait [#allocation9], 1024  }
  0x3c   :  { %768 = vsyncadd [#allocation9], 4294966272  ;;  %vm111_vm0 = vcmask 130048   ;;  %v110_v0 = vld [vmem:[#allocation2] sm:$0xff]  ;;  %v141_v2 = vld [vmem:[#allocation7] sm:$0xff]  ;;  %v778_v4 = vmov 0.0  }
  0x3d   :  { %v112_v1 = vsel %vm111_vm0, %v110_v0, 0.0  ;;  %v140_v3 = vld [vmem:[#allocation5] sm:$0xff]  ;;  %590 = vmatprep.subr.mxu0 %v778_v4  ;;  %vm779_vm1 = vmmov 0   ;;  %595 = vmatprep.subr.mxu1 %v778_v4  ;;  %s780_s4 = smov 112   ;;  %v560_v5 = vld [vmem:[%s933_s1] ss:$0 sm:$0xff] }
  0x3e   :  { %113 = vadd.xlane.f32.xlu0 %v112_v1  ;;  %592 = vmatprep.mubr.msk.f32.mxu0 %vm779_vm1, %v778_v4  ;;  %v561_v8 = vld [vmem:[%s934_s2] ss:$0 sm:$0xff]  ;;  %vm145_vm2 = vcmask 64512   ;;  %vm308_vm5 = vcmask 261120   ;;  %v340_v37 = vld [vmem:[#allocation8 + $0x18] sm:$0xff]  ;;  %v339_v38 = vld [vmem:[#allocation8 + $0x10] sm:$0xff] }
  0x3f   :  { %591 = vmatpush3.msra.mxu0 %v141_v2  ;;  %596 = vmatpush3.msra.mxu1 %v140_v3  ;;  %v565_v21 = vld [vmem:[%s937_s5] ss:$0 sm:$0xff]  ;;  %v337_v40 = vld [vmem:[#allocation8] sm:$0xff]  ;;  %v460_v2 = vld [vmem:[#allocation10 + $0x18] sm:$0xff]  ;;  %s781_s15 = smov [#allocation11]   ;;  %vm541_vm7 = vcmask 654336  }
  0x40   :  { %597 = vmatprep.mubr.msk.f32.mxu1 %vm779_vm1, %v778_v4  ;;  %600 = vmatprep.subr.mxu0 %v778_v4  ;;  %v338_v39 = vld [vmem:[#allocation8 + $0x8] sm:$0xff]  ;;  %v459_v3 = vld [vmem:[#allocation10 + $0x10] sm:$0xff]  ;;  %s549_s8 = sshll.u32 %s781_s15, 4  ;;  %s550_s8 = int_to_ptr.vmem [resolvable:$true] %s549_s8 }
  0x41   :  { %611 = vmatprep.subr.mxu1 %v778_v4  ;;  %v567_v45 = vld [vmem:[%s938_s6] ss:$0 sm:$0xff]  ;;  %p748_p12 = scmp.lt.s32.totalorder %s550_s8, %s550_s8 }
  0x42   :  { %v568_v47 = vld [vmem:[%s939_s7] ss:$0 sm:$0xff] }
  0x43   :  { %v569_v50 = vld [vmem:[%s941_s9] ss:$0 sm:$0xff] }
  0x54   :  { %143 = vrot.lane.b32.xlu0 %v110_v0, %s780_s4 }
  0xc7   :  { %v114_v6 = vpop.xlane.xlu0 %113 }
  0xc8   :  { %v116_v7 = vmul.f32 0.0625, %v114_v6  ;;  %v457_v6 = vld [vmem:[#allocation10] sm:$0xff] }
  0xca   :  { %v124_v9 = vmul.f32 %v560_v5, %v116_v7  ;;  %v458_v5 = vld [vmem:[#allocation10 + $0x8] sm:$0xff] }
  0xcb   :  { %v144_v10 = vpop.permute.xlu0 %143 }
  0xcc   :  { %v132_v11 = vadd.f32 %v561_v8, %v124_v9  ;;  %593 = vmatmul.mubr.msk.f32.vlgmr.msra.gmra.mxu0 %vm145_vm2, %v144_v10 }
  0xcd   :  { %608 = vmatprep.mubr.msk.f32.mxu0 %vm779_vm1, %v778_v4  ;;  %601 = vmatpush3.msra.mxu0 %v340_v37 }
  0xce   :  { %v134_v12 = vmul.f32 1.442695, %v132_v11  ;;  %vm133_vm3 = vcmp.gt.f32.partialorder %v132_v11, 0.0  ;;  %602 = vmatprep.subr.mxu0 %v778_v4 }
  0xcf   :  { %603 = vmatpush3.msra.mxu0 %v339_v38 }
  0xd0   :  { %633 = vpow2.f32 %v134_v12  ;;  %604 = vmatprep.subr.mxu0 %v778_v4 }
  0xd1   :  { %605 = vmatpush3.msra.mxu0 %v338_v39 }
  0xd2   :  { %606 = vmatprep.subr.mxu0 %v778_v4 }
  0xd3   :  { %607 = vmatpush3.msra.mxu0 %v337_v40 }
  0xdd   :  { %v634_v13 = vpop.eup %633 }
  0xde   :  { %v562_v14 = vadd.f32 -1.0, %v634_v13  ;;  %v573_v13 = vld [vmem:[%s943_s11] ss:$0 sm:$0xff] }
  0xe0   :  { %v137_v15 = vmul.f32 1.6732632, %v562_v14 }
  0xe2   :  { %v138_v16 = vsel %vm133_vm3, %v132_v11, %v137_v15  ;;  %v572_v11 = vld [vmem:[%s942_s10] ss:$0 sm:$0xff]  ;;  %s743_s10 = scalar_lea.vmem %s550_s8, 128 }
  0xe3   :  { %v139_v17 = vmul.f32 1.050701, %v138_v16  ;;  %p744_p11 = scmp.ne.s32.totalorder %s550_s8, %s743_s10  ;;  %p749_p13 = scmp.lt.s32.totalorder %s743_s10, %s743_s10 }
  0xe5   :  { %598 = vmatmul.mubr.msk.f32.vlgmr.msra.gmra.mxu1 %vm145_vm2, %v139_v17  ;;  %p750_p0 = por %p749_p13, %p748_p12 }
  0xe6   :  { %619 = vmatprep.mubr.msk.f32.mxu1 %vm779_vm1, %v778_v4  ;;  %612 = vmatpush3.msra.mxu1 %v460_v2 }
  0xe7   :  { %613 = vmatprep.subr.mxu1 %v778_v4  ;;  %p751_p1 = pnand %p750_p0, %p744_p11 }
  0xe8   :  { %614 = vmatpush3.msra.mxu1 %v459_v3 }
  0xe9   :  { %615 = vmatprep.subr.mxu1 %v778_v4 }
  0xea   :  { %616 = vmatpush3.msra.mxu1 %v458_v5 }
  0xeb   :  { %617 = vmatprep.subr.mxu1 %v778_v4  ;;  %v574_v4 = vld [vmem:[%s945_s13] ss:$0 sm:$0xff] }
  0xec   :  { %618 = vmatpush3.msra.mxu1 %v457_v6 }
 0x18c   :  { %v214_v18 = vpop.f32.mrf.mxu0 }
 0x18e   :  { %v594_v19 = vpop.f32.mrf.mxu0 }
 0x1a5   :  { %v287_v20 = vpop.f32.mrf.mxu1 }
 0x1a6   :  { %v288_v22 = vadd.f32 %v287_v20, %v214_v18 }
 0x1a7   :  { %v599_v23 = vpop.f32.mrf.mxu1 }
 0x1a8   :  { %v298_v24 = vadd.f32 %v565_v21, %v288_v22 }
 0x1aa   :  { %v300_v25 = vmul.f32 1.442695, %v298_v24  ;;  %vm299_vm4 = vcmp.gt.f32.partialorder %v298_v24, 0.0 }
 0x1ac   :  { %635 = vpow2.f32 %v300_v25 }
 0x1b9   :  { %v636_v26 = vpop.eup %635 }
 0x1ba   :  { %v566_v27 = vadd.f32 -1.0, %v636_v26 }
 0x1bc   :  { %v303_v28 = vmul.f32 1.6732632, %v566_v27 }
 0x1be   :  { %v304_v29 = vsel %vm299_vm4, %v298_v24, %v303_v28 }
 0x1bf   :  { %v305_v30 = vmul.f32 1.050701, %v304_v29 }
 0x1c1   :  { %v309_v31 = vsel %vm308_vm5, %v305_v30, 0.0 }
 0x1c2   :  { %310 = vadd.xlane.f32.xlu1 %v309_v31 }
 0x24b   :  { %v311_v32 = vpop.xlane.xlu1 %310 }
 0x24c   :  { %v313_v33 = vmul.f32 0.03125, %v311_v32 }
 0x24e   :  { %v314_v34 = vsub.f32 %v305_v30, %v313_v33 }
 0x250   :  { %v315_v35 = vmul.f32 %v314_v34, %v314_v34 }
 0x252   :  { %v316_v36 = vsel %vm308_vm5, %v315_v35, 0.0 }
 0x253   :  { %317 = vadd.xlane.f32.xlu1 %v316_v36 }
 0x2dc   :  { %v318_v41 = vpop.xlane.xlu1 %317 }
 0x2dd   :  { %v319_v42 = vmul.f32 0.03125, %v318_v41 }
 0x2df   :  { %v320_v43 = vadd.f32 1e-05, %v319_v42 }
 0x2e1   :  { %637 = vrsqrt.f32 %v320_v43 }
 0x2ee   :  { %v638_v44 = vpop.eup %637 }
 0x2ef   :  { %v322_v46 = vmul.f32 %v638_v44, %v314_v34 }
 0x2f1   :  { %v329_v48 = vmul.f32 %v567_v45, %v322_v46 }
 0x2f3   :  { %v336_v49 = vadd.f32 %v568_v47, %v329_v48 }
 0x2f5   :  { %609 = vmatmul.mubr.msk.f32.vlgmr.msra.gmra.mxu0 %vm308_vm5, %v336_v49 }
 0x3b5   :  { %v419_v51 = vpop.f32.mrf.mxu0 }
 0x3b6   :  { %v420_v52 = vadd.f32 %v569_v50, %v419_v51 }
 0x3b7   :  { %v610_v53 = vpop.f32.mrf.mxu0 }
 0x3b8   :  { %v424_v54 = vmul.f32 1.442695, %v420_v52  ;;  %vm423_vm6 = vcmp.gt.f32.partialorder %v420_v52, 0.0 }
 0x3ba   :  { %639 = vpow2.f32 %v424_v54 }
 0x3c7   :  { %v640_v55 = vpop.eup %639 }
 0x3c8   :  { %v571_v56 = vadd.f32 -1.0, %v640_v55 }
 0x3ca   :  { %v427_v57 = vmul.f32 1.6732632, %v571_v56 }
 0x3cc   :  { %v428_v58 = vsel %vm423_vm6, %v420_v52, %v427_v57 }
 0x3cd   :  { %v429_v59 = vmul.f32 1.050701, %v428_v58 }
 0x3cf   :  { %v430_v60 = vsel %vm308_vm5, %v429_v59, 0.0 }
 0x3d0   :  { %431 = vadd.xlane.f32.xlu1 %v430_v60 }
 0x459   :  { %v432_v61 = vpop.xlane.xlu1 %431 }
 0x45a   :  { %v433_v62 = vmul.f32 0.03125, %v432_v61 }
 0x45c   :  { %v434_v63 = vsub.f32 %v429_v59, %v433_v62 }
 0x45e   :  { %v435_v0 = vmul.f32 %v434_v63, %v434_v63 }
 0x460   :  { %v436_v1 = vsel %vm308_vm5, %v435_v0, 0.0 }
 0x461   :  { %437 = vadd.xlane.f32.xlu1 %v436_v1 }
 0x4ea   :  { %v438_v7 = vpop.xlane.xlu1 %437 }
 0x4eb   :  { %v439_v8 = vmul.f32 0.03125, %v438_v7 }
 0x4ed   :  { %v440_v9 = vadd.f32 1e-05, %v439_v8 }
 0x4ef   :  { %641 = vrsqrt.f32 %v440_v9 }
 0x4fc   :  { %v642_v10 = vpop.eup %641 }
 0x4fd   :  { %v442_v12 = vmul.f32 %v642_v10, %v434_v63 }
 0x4ff   :  { %v449_v14 = vmul.f32 %v572_v11, %v442_v12 }
 0x501   :  { %v456_v15 = vadd.f32 %v573_v13, %v449_v14 }
 0x503   :  { %620 = vmatmul.mubr.msk.f32.vlgmr.msra.gmra.mxu1 %vm308_vm5, %v456_v15 }
 0x5c3   :  { %v537_v16 = vpop.f32.mrf.mxu1 }
 0x5c4   :  { %v538_v17 = vadd.f32 %v574_v4, %v537_v16 }
 0x5c5   :  { %v621_v18 = vpop.f32.mrf.mxu1 }
 0x5c6   :  { %542 = vst.msk [vmem:[#allocation11] sm:$0xff] %vm541_vm7, %v538_v17 }
 0x5c7   :  { %754 = shalt.err (!%p751_p1)
}
 0x5c8   :  { %552 = dma.vmem_to_hbm [thread:$0]  %s550_s8, 128, %s946_s14, [#allocation4]  }
 0x5c9   :  { %769 = dma.done.wait [#allocation4], 128  }
 0x5ca   :  { %770 = vsyncadd [#allocation4], 4294967168 }
 0x5cb   :  { %556 = vsyncpa [#allocation3], 1 }
 0x5cc   :  { %557 = vsyncpa [#allocation6], 1 }
 0x5cd   :  { %558 = vsyncpa [#allocation9], 1 }
 0x5ce   :  { %559 = vsyncpa [#allocation4], 1 }

</bundles_post_ra>
